<compile_context>
chip_gen: v7x
topology: tpu7x:2x2x1
jax: 0.10.0
libtpu: 0.0.40
codegen_flags: <defaults>
</compile_context>

<pallas_src>
import functools

import jax
import jax.numpy as jnp
from jax.experimental import pallas as pl
from jax.experimental.pallas import tpu as pltpu

_LANE = 128


def _critic_kernel(xT_ref, w1_ref, w2_ref, pb_ref, b3_ref, out_ref, *, epilogue_dtype):
    """Fused 3-layer MLP in transposed (features x batch) layout."""
    xT = xT_ref[...]                                   # (obs_dim, bt), bf16

    # Packed per-feature params: col 0 = b1, col 1 = b2, col 2 = w3 (as column).
    pb = pb_ref[...]                                   # (H, 3), fp32
    b1 = pb[:, 0:1]                                    # (H, 1)
    b2 = pb[:, 1:2]                                    # (H, 1)
    w3 = pb[:, 2:3]                                    # (H, 1)

    # Layer 1: (H, obs_dim) @ (obs_dim, bt) on the MXU, fp32 accumulation.
    h1 = jnp.dot(w1_ref[...], xT, preferred_element_type=jnp.float32)
    # Bias + ReLU epilogue (bf16 on v6e/v7x, fp32 on v5e); batch stays on lanes.
    h1 = jnp.maximum(h1.astype(epilogue_dtype) + b1.astype(epilogue_dtype), 0)

    # Layer 2: (H, H) @ (H, bt); activations re-cast to the MXU input dtype.
    h2 = jnp.dot(w2_ref[...], h1.astype(w2_ref.dtype),
                 preferred_element_type=jnp.float32)
    h2 = jnp.maximum(h2.astype(epilogue_dtype) + b2.astype(epilogue_dtype), 0)

    # Value head: VPU multiply against the w3 column + sublane (XLU) reduce,
    # giving a lane-dense (1, bt) row; scalar bias read from SMEM.
    v = jnp.sum(h2.astype(jnp.float32) * w3, axis=0, keepdims=True) + b3_ref[0, 0]
    out_ref[...] = v.astype(out_ref.dtype)


def _hw_config():
    """Best-effort TPU generation detection (safe fallbacks everywhere)."""
    kind = ""
    try:
        kind = jax.devices()[0].device_kind.lower()
    except Exception:
        pass
    cfg = {"vmem_bytes": 64 * 1024 * 1024, "two_cores": False, "bf16_vpu": True}
    if "v5" in kind:                 # v5e/v5p: 128 MiB VMEM, no bf16 VPU path
        cfg.update(vmem_bytes=128 * 1024 * 1024, bf16_vpu=False)
    elif "v6" in kind:               # v6e: 128 MiB VMEM, bf16 VPU
        cfg.update(vmem_bytes=128 * 1024 * 1024)
    elif "v4" in kind:
        cfg.update(vmem_bytes=128 * 1024 * 1024, bf16_vpu=False)
    elif "7" in kind:                # v7x: 64 MiB VMEM per TC, 2 TensorCores
        cfg.update(vmem_bytes=64 * 1024 * 1024, two_cores=True)
    try:                             # precise per-core VMEM when queryable
        cfg["vmem_bytes"] = int(pltpu.get_tpu_info().vmem_capacity_bytes)
    except Exception:
        pass
    return cfg


def _vmem_tile_bytes(bt, obs_dim, H, in_bytes):
    """Rough per-grid-step VMEM footprint (double-buffered tiles + live fp32)."""
    lanes = max(bt, _LANE)
    x_tile = 2 * obs_dim * lanes * in_bytes            # double-buffered x^T tile
    out_tile = 2 * 8 * lanes * 4                       # sublane-padded fp32 out tile
    weights = 2 * (H * obs_dim + H * H) * in_bytes     # w1, w2
    biases = 2 * max(H, 8) * _LANE * 4                 # packed (H,3) pads to (H,128)
    live = 3 * H * lanes * 4                           # fp32 accumulators + slack
    return x_tile + out_tile + weights + biases + live


def _pick_batch_tile(B, obs_dim, H, *, two_cores, vmem_budget):
    """Lane-aligned batch tile (batch lives on the 128-lane axis).

    Single-TC parts (v5e/v6e): one full-batch grid step when it fits (splitting
    buys nothing and just adds per-step overhead).  v7x (2 TCs, 'parallel'
    batch axis): prefer an even number of grid steps so both cores get equal
    work, with tiles as large as the VMEM budget allows.
    """
    def fits(t):
        return _vmem_tile_bytes(t, obs_dim, H, 2) <= vmem_budget

    aligned = [t for t in (8192, 4096, 2048, 1024, 512, 256, 128)
               if t <= B and B % t == 0]

    if not two_cores:
        if fits(B):
            return B                                   # grid=(1,)
        for t in aligned:
            if fits(t):
                return t
        return aligned[-1] if aligned else B

    for t in aligned:                                  # even step count first
        if (B // t) >= 2 and (B // t) % 2 == 0 and fits(t):
            return t
    for t in aligned:
        if (B // t) >= 2 and fits(t):
            return t
    return B


def critic_forward(x, params, *, batch_tile=None, compute_dtype=jnp.bfloat16,
                   epilogue_dtype=None):
    """Run the Critic forward pass with a single fused Pallas kernel.

    x: (B, obs_dim) float32
    params (PyTorch nn.Linear layout): w1 (H, obs_dim), b1 (H,), w2 (H, H),
        b2 (H,), w3 (1, H), b3 (1,)
    returns: (B, 1) float32
    """
    B, obs_dim = x.shape
    H, obs_dim_w = params["w1"].shape
    assert obs_dim_w == obs_dim

    cfg = _hw_config()
    if epilogue_dtype is None:
        epilogue_dtype = jnp.bfloat16 if cfg["bf16_vpu"] else jnp.float32
    vmem_cap = (cfg["vmem_bytes"] * 3) // 4            # leave compiler headroom

    if batch_tile is None:
        batch_tile = _pick_batch_tile(B, obs_dim, H,
                                      two_cores=cfg["two_cores"],
                                      vmem_budget=vmem_cap)
    assert B % batch_tile == 0, "B must be divisible by batch_tile"
    assert batch_tile == B or batch_tile % _LANE == 0, \
        "batch_tile must be a multiple of 128 (lane dim) unless it is the full batch"
    grid = (B // batch_tile,)

    in_bytes = jnp.dtype(compute_dtype).itemsize
    # Batch-on-lanes layout: pre-transpose x (review-sanctioned; kernel is
    # VALU/store bound at these sizes, not HBM bound).
    x_t = x.astype(compute_dtype).T                    # (obs_dim, B)
    w1 = params["w1"].astype(compute_dtype)            # (H, obs_dim)
    w2 = params["w2"].astype(compute_dtype)            # (H, H)
    pb = jnp.stack([params["b1"].reshape(H),
                    params["b2"].reshape(H),
                    params["w3"].reshape(H)], axis=1).astype(jnp.float32)  # (H, 3)
    b3 = params["b3"].reshape(1, 1).astype(jnp.float32)

    vmem_est = _vmem_tile_bytes(batch_tile, obs_dim, H, in_bytes)
    vmem_limit = int(min(vmem_cap, max(32 * 1024 * 1024, 2 * vmem_est)))

    kernel = functools.partial(_critic_kernel, epilogue_dtype=epilogue_dtype)

    out = pl.pallas_call(
        kernel,
        out_shape=jax.ShapeDtypeStruct((1, B), jnp.float32),
        grid_spec=pltpu.PrefetchScalarGridSpec(
            num_scalar_prefetch=0,
            grid=grid,
            in_specs=[
                pl.BlockSpec((obs_dim, batch_tile), lambda i: (0, i)),  # x^T tile
                pl.BlockSpec((H, obs_dim), lambda i: (0, 0)),           # w1
                pl.BlockSpec((H, H), lambda i: (0, 0)),                 # w2
                pl.BlockSpec((H, 3), lambda i: (0, 0)),                 # packed b1,b2,w3
                pl.BlockSpec(memory_space=pltpu.MemorySpace.SMEM),      # b3 scalar
            ],
            out_specs=pl.BlockSpec((1, batch_tile), lambda i: (0, i)),  # lane-dense row
        ),
        compiler_params=pltpu.CompilerParams(
            dimension_semantics=("parallel",),
            vmem_limit_bytes=vmem_limit,
        ),
    )(x_t, w1, w2, pb, b3)

    return out.reshape(B, 1)


def init_critic_params(key, obs_dim, hidden=64):
    """PyTorch nn.Linear default init: U(-1/sqrt(fan_in), 1/sqrt(fan_in)),
    weights stored PyTorch-style as (out, in)."""
    def linear(k, fan_in, fan_out):
        kw, kb = jax.random.split(k)
        bound = 1.0 / jnp.sqrt(jnp.float32(fan_in))
        w = jax.random.uniform(kw, (fan_out, fan_in), jnp.float32, -bound, bound)
        b = jax.random.uniform(kb, (fan_out,), jnp.float32, -bound, bound)
        return w, b

    k1, k2, k3 = jax.random.split(key, 3)
    w1, b1 = linear(k1, obs_dim, hidden)
    w2, b2 = linear(k2, hidden, hidden)
    w3, b3 = linear(k3, hidden, 1)
    return {"w1": w1, "b1": b1, "w2": w2, "b2": b2, "w3": w3, "b3": b3}


def critic_reference(x, p, compute_dtype=jnp.float32, epilogue_dtype=jnp.float32):
    """Pure-JAX reference with the same dtype casts / layout as the kernel."""
    f32 = jnp.float32
    H = p["w1"].shape[0]
    xT = x.astype(compute_dtype).T
    w1 = p["w1"].astype(compute_dtype)
    w2 = p["w2"].astype(compute_dtype)
    h1 = jnp.dot(w1, xT, preferred_element_type=f32)
    h1 = jnp.maximum(h1.astype(epilogue_dtype)
                     + p["b1"].reshape(H, 1).astype(epilogue_dtype), 0)
    h2 = jnp.dot(w2, h1.astype(compute_dtype), preferred_element_type=f32)
    h2 = jnp.maximum(h2.astype(epilogue_dtype)
                     + p["b2"].reshape(H, 1).astype(epilogue_dtype), 0)
    v = jnp.sum(h2.astype(f32) * p["w3"].reshape(H, 1).astype(f32),
                axis=0, keepdims=True) + p["b3"].reshape(1, 1)
    return v.T.astype(f32)                             # (B, 1)


if __name__ == "__main__":
    key = jax.random.PRNGKey(0)
    kx, kp = jax.random.split(key)

    B, obs_dim, hidden = 256, 32, 64
    x = jax.random.normal(kx, (B, obs_dim), jnp.float32)
    params = init_critic_params(kp, obs_dim, hidden)

    cfg = _hw_config()
    epi = jnp.bfloat16 if cfg["bf16_vpu"] else jnp.float32

    out = critic_forward(x, params, epilogue_dtype=epi)
    out = jax.block_until_ready(out)

    ref = critic_reference(x, params, compute_dtype=jnp.bfloat16, epilogue_dtype=epi)
    assert out.shape == (B, 1)
    assert jnp.allclose(out, ref, atol=2e-2, rtol=2e-2), "mismatch vs reference"

    print("KERNEL_OK")
</pallas_src>

<mosaic_0001>
module attributes {stable_mosaic.version = 11 : i64} {
  func.func @_critic_kernel(%arg0: i32, %arg1: memref<32x256xbf16, #tpu.memory_space<vmem>>, %arg2: memref<64x32xbf16, #tpu.memory_space<vmem>>, %arg3: memref<64x64xbf16, #tpu.memory_space<vmem>>, %arg4: memref<64x3xf32, #tpu.memory_space<vmem>>, %arg5: memref<1x1xf32, #tpu.memory_space<smem>>, %arg6: memref<1x256xf32, #tpu.memory_space<vmem>>) attributes {dimension_semantics = [#tpu.dimension_semantics<parallel>], iteration_bounds = array<i64: 1>, scalar_prefetch = 0 : i64, scratch_operands = 0 : i64, tpu.core_type = #tpu.core_type<tc>, window_params = [{transform_indices = @transform_0, window_bounds = array<i64: 32, 256>}, {pipeline_mode = #tpu.pipeline_mode<synchronous>, transform_indices = @transform_1, window_bounds = array<i64: 64, 32>}, {pipeline_mode = #tpu.pipeline_mode<synchronous>, transform_indices = @transform_2, window_bounds = array<i64: 64, 64>}, {pipeline_mode = #tpu.pipeline_mode<synchronous>, transform_indices = @transform_3, window_bounds = array<i64: 64, 3>}, {transform_indices = @transform_4, window_bounds = array<i64: 1, 1>}, {transform_indices = @transform_5, window_bounds = array<i64: 1, 256>}]} {
    %c0 = arith.constant 0 : index
    %c0_0 = arith.constant 0 : index
    %0 = vector.load %arg1[%c0, %c0_0] : memref<32x256xbf16, #tpu.memory_space<vmem>>, vector<32x256xbf16>
    %c0_1 = arith.constant 0 : index
    %c0_2 = arith.constant 0 : index
    %1 = vector.load %arg4[%c0_1, %c0_2] : memref<64x3xf32, #tpu.memory_space<vmem>>, vector<64x3xf32>
    %2 = vector.extract_strided_slice %1 {offsets = [0, 0], sizes = [64, 1], strides = [1, 1]} : vector<64x3xf32> to vector<64x1xf32>
    %3 = vector.extract_strided_slice %1 {offsets = [0, 1], sizes = [64, 1], strides = [1, 1]} : vector<64x3xf32> to vector<64x1xf32>
    %4 = vector.extract_strided_slice %1 {offsets = [0, 2], sizes = [64, 1], strides = [1, 1]} : vector<64x3xf32> to vector<64x1xf32>
    %c0_3 = arith.constant 0 : index
    %c0_4 = arith.constant 0 : index
    %5 = vector.load %arg2[%c0_3, %c0_4] : memref<64x32xbf16, #tpu.memory_space<vmem>>, vector<64x32xbf16>
    %cst = arith.constant dense<0.000000e+00> : vector<64x256xf32>
    %6 = tpu.matmul %5, %0, %cst {dimension_numbers = #tpu.dot_dimension_numbers<[1], [0], [0], [1], [0, 0, 1, 1], [], []>} : vector<64x32xbf16>, vector<32x256xbf16>, vector<64x256xf32> -> vector<64x256xf32>
    %7 = arith.truncf %6 : vector<64x256xf32> to vector<64x256xbf16>
    %8 = arith.truncf %2 : vector<64x1xf32> to vector<64x1xbf16>
    %9 = vector.broadcast %8 : vector<64x1xbf16> to vector<64x256xbf16>
    %10 = arith.addf %7, %9 : vector<64x256xbf16>
    %cst_5 = arith.constant 0.000000e+00 : bf16
    %11 = vector.broadcast %cst_5 : bf16 to vector<64x256xbf16>
    %12 = arith.maximumf %10, %11 : vector<64x256xbf16>
    %c0_6 = arith.constant 0 : index
    %c0_7 = arith.constant 0 : index
    %13 = vector.load %arg3[%c0_6, %c0_7] : memref<64x64xbf16, #tpu.memory_space<vmem>>, vector<64x64xbf16>
    %cst_8 = arith.constant dense<0.000000e+00> : vector<64x256xf32>
    %14 = tpu.matmul %13, %12, %cst_8 {dimension_numbers = #tpu.dot_dimension_numbers<[1], [0], [0], [1], [0, 0, 1, 1], [], []>} : vector<64x64xbf16>, vector<64x256xbf16>, vector<64x256xf32> -> vector<64x256xf32>
    %15 = arith.truncf %14 : vector<64x256xf32> to vector<64x256xbf16>
    %16 = arith.truncf %3 : vector<64x1xf32> to vector<64x1xbf16>
    %17 = vector.broadcast %16 : vector<64x1xbf16> to vector<64x256xbf16>
    %18 = arith.addf %15, %17 : vector<64x256xbf16>
    %cst_9 = arith.constant 0.000000e+00 : bf16
    %19 = vector.broadcast %cst_9 : bf16 to vector<64x256xbf16>
    %20 = arith.maximumf %18, %19 : vector<64x256xbf16>
    %21 = arith.extf %20 : vector<64x256xbf16> to vector<64x256xf32>
    %22 = vector.broadcast %4 : vector<64x1xf32> to vector<64x256xf32>
    %23 = arith.mulf %21, %22 : vector<64x256xf32>
    %cst_10 = arith.constant dense<0.000000e+00> : vector<256xf32>
    %24 = vector.multi_reduction <add>, %23, %cst_10 [0] : vector<64x256xf32> to vector<256xf32>
    %25 = vector.shape_cast %24 : vector<256xf32> to vector<1x256xf32>
    %c0_11 = arith.constant 0 : index
    %c0_12 = arith.constant 0 : index
    %26 = memref.load %arg5[%c0_11, %c0_12] : memref<1x1xf32, #tpu.memory_space<smem>>
    %27 = vector.broadcast %26 : f32 to vector<1x256xf32>
    %28 = arith.addf %25, %27 : vector<1x256xf32>
    %c0_13 = arith.constant 0 : index
    %c0_14 = arith.constant 0 : index
    %29 = vector.load %arg6[%c0_13, %c0_14] : memref<1x256xf32, #tpu.memory_space<vmem>>, vector<1x256xf32>
    tpu.vector_store %arg6[%c0_13, %c0_14], %28 {strides = array<i32>} : memref<1x256xf32, #tpu.memory_space<vmem>>, vector<1x256xf32>,
    return
  }
  func.func @transform_0(%arg0: i32) -> (i32, i32) {
    %c0_i32 = arith.constant 0 : i32
    %c0_i32_0 = arith.constant 0 : i32
    return %c0_i32, %arg0 : i32, i32
  }
  func.func @transform_1(%arg0: i32) -> (i32, i32) {
    %c0_i32 = arith.constant 0 : i32
    %c0_i32_0 = arith.constant 0 : i32
    %c0_i32_1 = arith.constant 0 : i32
    return %c0_i32, %c0_i32_0 : i32, i32
  }
  func.func @transform_2(%arg0: i32) -> (i32, i32) {
    %c0_i32 = arith.constant 0 : i32
    %c0_i32_0 = arith.constant 0 : i32
    %c0_i32_1 = arith.constant 0 : i32
    return %c0_i32, %c0_i32_0 : i32, i32
  }
  func.func @transform_3(%arg0: i32) -> (i32, i32) {
    %c0_i32 = arith.constant 0 : i32
    %c0_i32_0 = arith.constant 0 : i32
    %c0_i32_1 = arith.constant 0 : i32
    return %c0_i32, %c0_i32_0 : i32, i32
  }
  func.func @transform_4(%arg0: i32) -> (i32, i32) {
    %c0_i32 = arith.constant 0 : i32
    %c0_i32_0 = arith.constant 0 : i32
    %c0_i32_1 = arith.constant 0 : i32
    return %c0_i32, %c0_i32_0 : i32, i32
  }
  func.func @transform_5(%arg0: i32) -> (i32, i32) {
    %c0_i32 = arith.constant 0 : i32
    %c0_i32_0 = arith.constant 0 : i32
    return %c0_i32, %arg0 : i32, i32
  }
}

</mosaic_0001>

<bundles_post_ra>
// kernel: tpu_custom_call.1
= control target key start
LH: loop header
LB: loop body
LE: loop exit
PB: predicated region body
PF: predicated region fallthrough
CT: control target
= control target key end

     0   :  { %v581_v2 = vmov 0   ;;  %vm83_vm0 = vcmask 261120   ;;  %s721_s0 = inlined_call_operand.vmem [shape: bf16[32,256], index: 0, kind: input, shape index: {}]   ;;  %s722_s1 = inlined_call_operand.vmem [shape: bf16[64,32], index: 1, kind: input, shape index: {}]   ;;  %s723_s2 = inlined_call_operand.vmem [shape: bf16[64,64], index: 2, kind: input, shape index: {}]   ;;  %s724_s3 = inlined_call_operand.vmem [shape: f32[64,3], index: 3, kind: input, shape index: {}]   ;;  %s725_s4 = inlined_call_operand.<no memory space> [shape: f32[1,1], index: 4, kind: input, shape index: {}]   ;;  %s726_s5 = inlined_call_operand.hbm [shape: f32[1,256], index: 5, kind: output, shape index: {}]  }
   0x1   :  { %v543_v0 = vld [vmem:[%s721_s0 + $0x4] ss:$8 sps:$4 sm:$0xff]   ;;  %v545_v1 = vld [vmem:[%s721_s0] ss:$8 sps:$4 sm:$0xff]   ;;  %128 = vmatprep.mubr.bf16.mxu0 %v581_v2  ;;  %535 = vset.pattern.permute.xlu0 %v581_v2  ;;  %v546_v3 = vld [vmem:[%s721_s0 + $0x14] ss:$8 sps:$4 sm:$0xff]  }
   0x2   :  { %96 = vmatprep.subr.bf16.mxu0 %v543_v0  ;;  %536 = vset.pattern.permute.xlu1 %v581_v2  ;;  %v548_v4 = vld [vmem:[%s721_s0 + $0x10] ss:$8 sps:$4 sm:$0xff]   ;;  %v549_v5 = vld [vmem:[%s722_s1] sm:$0xff]   ;;  %v28_v7 = vld [vmem:[%s724_s3 + $0x8] sm:$0xff] }
   0x3   :  { %97 = vmatpush1.bf16.msra.mxu0 %v545_v1  ;;  %290 = vmatprep.mubr.bf16.mxu1 %v581_v2  ;;  %v27_v6 = vld [vmem:[%s724_s3] sm:$0xff]  ;;  %v29_v8 = vld [vmem:[%s724_s3 + $0x10] sm:$0xff]  ;;  %v30_v9 = vld [vmem:[%s724_s3 + $0x18] sm:$0xff] }
   0x4   :  { %98 = vmatprep.subr.bf16.mxu0 %v546_v3  ;;  %v177_v10 = vpack.c.bf16 %v28_v7, %v27_v6  ;;  %v31_v11 = vld [vmem:[%s724_s3 + $0x20] sm:$0xff]  ;;  %v32_v12 = vld [vmem:[%s724_s3 + $0x28] sm:$0xff]  ;;  %v33_v13 = vld [vmem:[%s724_s3 + $0x30] sm:$0xff]  ;;  %v178_v16 = vpack.c.bf16 %v30_v9, %v29_v8 }
   0x5   :  { %v179_v14 = vpack.c.bf16 %v32_v12, %v31_v11  ;;  %v34_v15 = vld [vmem:[%s724_s3 + $0x38] sm:$0xff] }
   0x6   :  { %183 = vperm.xlu0 %535, %v177_v10   ;;  %v180_v17 = vpack.c.bf16 %v34_v15, %v33_v13 }
   0x7   :  { %99 = vmatpush1.bf16.msra.mxu0 %v548_v4  ;;  %193 = vperm.xlu1 %536, %v179_v14  }
   0xa   :  { %518 = vmatmul.mubr.msk.bf16.vlgmr.msra.gmra.mrb[0].mxu0 %vm83_vm0, %v549_v5 }
   0xb   :  { %138 = vmatprep.mubr.bf16.mxu0 %v581_v2 }
   0xc   :  { %11 = vsyncpa [#allocation4], 0  ;;  %v550_v18 = vld [vmem:[%s722_s1 + $0x8] sm:$0xff]   ;;  %188 = vperm.xlu0 %535, %v178_v16   ;;  %198 = vperm.xlu1 %536, %v180_v17   ;;  %v551_v19 = vld [vmem:[%s722_s1 + $0x10] sm:$0xff]   ;;  %v582_v21 = vmov 1   ;;  %v583_v22 = vmov 2  }
   0xd   :  { %v552_v20 = vld [vmem:[%s722_s1 + $0x18] sm:$0xff]   ;;  %v553_v4 = vld [vmem:[%s723_s2] sm:$0xff]   ;;  %vm245_vm1 = vcmask 523264   ;;  %v554_v5 = vld [vmem:[%s723_s2 + $0x8] sm:$0xff]   ;;  %s585_s6 = smov [#allocation3]  }
   0xe   :  { %s502_s7 = sshll.u32 %s585_s6, 4  ;;  %s503_s7 = int_to_ptr.vmem [resolvable:$true] %s502_s7 }
   0xf   :  { %s557_s8 = scalar_lea.vmem %s503_s7, 32  ;;  %p562_p1 = scmp.lt.s32.totalorder %s503_s7, %s503_s7 }
  0x10   :  { %538 = vset.pattern.permute.xlu1 %v582_v21  ;;  %537 = vset.pattern.permute.xlu0 %v582_v21  ;;  %p558_p0 = scmp.ne.s32.totalorder %s503_s7, %s557_s8  ;;  %p563_p2 = scmp.lt.s32.totalorder %s557_s8, %s557_s8 }
  0x11   :  { %344 = vperm.xlu1 %538, %v178_v16   ;;  %340 = vperm.xlu0 %537, %v177_v10  }
  0x12   :  { %519 = vmatmul.mubr.msk.bf16.gmra.mrb[4].mxu0 %vm83_vm0, %v550_v18  ;;  %p564_p3 = por %p563_p2, %p562_p1 }
  0x13   :  { %148 = vmatprep.mubr.bf16.mxu0 %v581_v2 }
  0x14   :  { %p565_p4 = pnand %p564_p3, %p558_p0 }
  0x15   :  { %348 = vperm.xlu1 %538, %v179_v14   ;;  %539 = vset.pattern.permute.xlu0 %v583_v22 }
  0x16   :  { %389 = vperm.xlu0 %539, %v27_v6   ;;  %v555_v6 = vld [vmem:[%s723_s2 + $0x10] sm:$0xff]  }
  0x19   :  { %540 = vset.pattern.permute.xlu1 %v583_v22 }
  0x1a   :  { %520 = vmatmul.mubr.msk.bf16.gmra.mrb[8].mxu0 %vm83_vm0, %v551_v19  ;;  %394 = vperm.xlu1 %540, %v28_v7   ;;  %v556_v7 = vld [vmem:[%s723_s2 + $0x18] sm:$0xff]  }
  0x1b   :  { %158 = vmatprep.mubr.bf16.mxu0 %v581_v2  ;;  %541 = vset.pattern.permute.xlu0 %v582_v21 }
  0x1c   :  { %352 = vperm.xlu0 %541, %v180_v17  }
  0x1e   :  { %399 = vperm.xlu1 %540, %v29_v8  }
  0x20   :  { %542 = vset.pattern.permute.xlu0 %v583_v22 }
  0x21   :  { %414 = vperm.xlu0 %542, %v32_v12  }
  0x22   :  { %521 = vmatmul.mubr.msk.bf16.gmra.mrb[12].mxu0 %vm83_vm0, %v552_v20  ;;  %404 = vperm.xlu1 %540, %v30_v9  }
  0x26   :  { %409 = vperm.xlu1 %540, %v31_v11  }
  0x2a   :  { %419 = vperm.xlu1 %540, %v33_v13  }
  0x2e   :  { %424 = vperm.xlu1 %540, %v34_v15  }
  0x85   :  { %v184_v26 = vpop.permute.xlu0 %183 }
  0x86   :  { %v194_v48 = vpop.permute.xlu1 %193 }
  0x8b   :  { %v189_v37 = vpop.permute.xlu0 %188  ;;  %v199_v61 = vpop.permute.xlu1 %198 }
  0x90   :  { %v345_v8 = vpop.permute.xlu1 %344  ;;  %v341_v13 = vpop.permute.xlu0 %340 }
  0x94   :  { %v349_v9 = vpop.permute.xlu1 %348 }
  0x99   :  { %v395_v18 = vpop.permute.xlu1 %394 }
  0xdd   :  { %v130_v23 = vpop.f32.mrb[0].mxu0 }
  0xde   :  { %v132_v24 = vpop.f32.mrb[1].mxu0 }
  0xdf   :  { %v134_v25 = vpop.f32.mrb[2].mxu0 }
  0xe0   :  { %v169_v27 = vpack.c.bf16 %v134_v25, %v130_v23  ;;  %v136_v28 = vpop.f32.mrb[3].mxu0 }
  0xe1   :  { %v170_v29 = vpack.c.bf16 %v136_v28, %v132_v24 }
  0xe2   :  { %v201_v30 = vadd.bf16 %v184_v26, %v169_v27 }
  0xe3   :  { %v202_v31 = vadd.bf16 %v184_v26, %v170_v29  ;;  %v400_v29 = vpop.permute.xlu1 %399 }
  0xe4   :  { %v209_v35 = vmax.bf16 %v581_v2, %v201_v30 }
  0xe5   :  { %v140_v32 = vpop.f32.mrb[4].mxu0  ;;  %v210_v33 = vmax.bf16 %v581_v2, %v202_v31  ;;  %v390_v31 = vpop.permute.xlu0 %389 }
  0xe6   :  { %v142_v34 = vpop.f32.mrb[5].mxu0 }
  0xe7   :  { %v144_v36 = vpop.f32.mrb[6].mxu0  ;;  %258 = vmatprep.subr.bf16.mxu1 %v210_v33 }
  0xe8   :  { %v171_v38 = vpack.c.bf16 %v144_v36, %v140_v32  ;;  %v146_v39 = vpop.f32.mrb[7].mxu0  ;;  %259 = vmatpush1.bf16.msra.mxu1 %v209_v35 }
  0xe9   :  { %v172_v40 = vpack.c.bf16 %v146_v39, %v142_v34 }
  0xea   :  { %v203_v41 = vadd.bf16 %v189_v37, %v171_v38 }
  0xeb   :  { %v204_v42 = vadd.bf16 %v189_v37, %v172_v40 }
  0xec   :  { %v211_v45 = vmax.bf16 %v581_v2, %v203_v41 }
  0xed   :  { %v212_v43 = vmax.bf16 %v581_v2, %v204_v42  ;;  %v150_v44 = vpop.f32.mrb[8].mxu0 }
  0xee   :  { %v152_v46 = vpop.f32.mrb[9].mxu0 }
  0xef   :  { %v154_v47 = vpop.f32.mrb[10].mxu0  ;;  %260 = vmatprep.subr.bf16.mxu1 %v212_v43 }
  0xf0   :  { %v173_v49 = vpack.c.bf16 %v154_v47, %v150_v44  ;;  %v156_v50 = vpop.f32.mrb[11].mxu0  ;;  %261 = vmatpush1.bf16.msra.mxu1 %v211_v45 }
  0xf1   :  { %v174_v51 = vpack.c.bf16 %v156_v50, %v152_v46  ;;  %v405_v46 = vpop.permute.xlu1 %404 }
  0xf2   :  { %v205_v52 = vadd.bf16 %v194_v48, %v173_v49 }
  0xf3   :  { %v206_v53 = vadd.bf16 %v194_v48, %v174_v51 }
  0xf4   :  { %v213_v56 = vmax.bf16 %v581_v2, %v205_v52 }
  0xf5   :  { %v214_v54 = vmax.bf16 %v581_v2, %v206_v53  ;;  %v160_v55 = vpop.f32.mrb[12].mxu0 }
  0xf6   :  { %v162_v57 = vpop.f32.mrb[13].mxu0 }
  0xf7   :  { %v164_v58 = vpop.f32.mrb[14].mxu0  ;;  %262 = vmatprep.subr.bf16.mxu1 %v214_v54 }
  0xf8   :  { %v175_v59 = vpack.c.bf16 %v164_v58, %v160_v55  ;;  %v166_v60 = vpop.f32.mrb[15].mxu0  ;;  %263 = vmatpush1.bf16.msra.mxu1 %v213_v56 }
  0xf9   :  { %v176_v62 = vpack.c.bf16 %v166_v60, %v162_v57  ;;  %v353_v57 = vpop.permute.xlu0 %352 }
  0xfa   :  { %v207_v63 = vadd.bf16 %v199_v61, %v175_v59 }
  0xfb   :  { %v208_v0 = vadd.bf16 %v199_v61, %v176_v62 }
  0xfc   :  { %v215_v3 = vmax.bf16 %v581_v2, %v207_v63 }
  0xfd   :  { %v216_v1 = vmax.bf16 %v581_v2, %v208_v0 }
  0xff   :  { %264 = vmatprep.subr.bf16.mxu1 %v216_v1 }
 0x100   :  { %265 = vmatpush1.bf16.msra.mxu1 %v215_v3  ;;  %v410_v3 = vpop.permute.xlu1 %409 }
 0x103   :  { %526 = vmatmul.mubr.msk.bf16.vlgmr.msra.gmra.mrb[0].mxu1 %vm245_vm1, %v553_v4 }
 0x104   :  { %300 = vmatprep.mubr.bf16.mxu1 %v581_v2 }
 0x10b   :  { %527 = vmatmul.mubr.msk.bf16.gmra.mrb[4].mxu1 %vm245_vm1, %v554_v5 }
 0x10c   :  { %310 = vmatprep.mubr.bf16.mxu1 %v581_v2 }
 0x113   :  { %528 = vmatmul.mubr.msk.bf16.gmra.mrb[8].mxu1 %vm245_vm1, %v555_v6 }
 0x114   :  { %320 = vmatprep.mubr.bf16.mxu1 %v581_v2 }
 0x11b   :  { %529 = vmatmul.mubr.msk.bf16.gmra.mrb[12].mxu1 %vm245_vm1, %v556_v7 }
 0x1d6   :  { %v292_v10 = vpop.f32.mrb[0].mxu1 }
 0x1d7   :  { %v294_v11 = vpop.f32.mrb[1].mxu1 }
 0x1d8   :  { %v296_v12 = vpop.f32.mrb[2].mxu1 }
 0x1d9   :  { %v331_v14 = vpack.c.bf16 %v296_v12, %v292_v10  ;;  %v298_v15 = vpop.f32.mrb[3].mxu1 }
 0x1da   :  { %v332_v16 = vpack.c.bf16 %v298_v15, %v294_v11  ;;  %v415_v11 = vpop.permute.xlu0 %414 }
 0x1db   :  { %v355_v17 = vadd.bf16 %v341_v13, %v331_v14 }
 0x1dc   :  { %v356_v19 = vadd.bf16 %v341_v13, %v332_v16 }
 0x1dd   :  { %v363_v20 = vmax.bf16 %v581_v2, %v355_v17 }
 0x1de   :  { %v364_v21 = vmax.bf16 %v581_v2, %v356_v19  ;;  %v302_v22 = vpop.f32.mrb[4].mxu1 }
 0x1df   :  { %v304_v23 = vpop.f32.mrb[5].mxu1  ;;  %v373_v25 = vunpack.c.h.bf16 %v363_v20  ;;  %v371_v26 = vunpack.c.l.bf16 %v363_v20 }
 0x1e0   :  { %v306_v24 = vpop.f32.mrb[6].mxu1  ;;  %v374_v30 = vunpack.c.h.bf16 %v364_v21  ;;  %v372_v32 = vunpack.c.l.bf16 %v364_v21 }
 0x1e1   :  { %v333_v27 = vpack.c.bf16 %v306_v24, %v302_v22  ;;  %v308_v28 = vpop.f32.mrb[7].mxu1  ;;  %v427_v36 = vmul.f32 %v390_v31, %v371_v26  ;;  %v429_v37 = vmul.f32 %v395_v18, %v373_v25  ;;  %v420_v22 = vpop.permute.xlu1 %419 }
 0x1e2   :  { %v334_v33 = vpack.c.bf16 %v308_v28, %v304_v23  ;;  %v428_v39 = vmul.f32 %v390_v31, %v372_v32  ;;  %v430_v40 = vmul.f32 %v395_v18, %v374_v30 }
 0x1e3   :  { %v357_v34 = vadd.bf16 %v345_v8, %v333_v27  ;;  %v443_v50 = vadd.f32 %v429_v37, %v427_v36 }
 0x1e4   :  { %v358_v35 = vadd.bf16 %v345_v8, %v334_v33  ;;  %v456_v54 = vadd.f32 %v430_v40, %v428_v39 }
 0x1e5   :  { %v365_v38 = vmax.bf16 %v581_v2, %v357_v34 }
 0x1e6   :  { %v366_v41 = vmax.bf16 %v581_v2, %v358_v35  ;;  %v312_v42 = vpop.f32.mrb[8].mxu1  ;;  %v425_v35 = vpop.permute.xlu1 %424 }
 0x1e7   :  { %v375_v43 = vunpack.c.l.bf16 %v365_v38  ;;  %v377_v44 = vunpack.c.h.bf16 %v365_v38  ;;  %v314_v45 = vpop.f32.mrb[9].mxu1 }
 0x1e8   :  { %v376_v47 = vunpack.c.l.bf16 %v366_v41  ;;  %v378_v48 = vunpack.c.h.bf16 %v366_v41  ;;  %v316_v49 = vpop.f32.mrb[10].mxu1 }
 0x1e9   :  { %v431_v51 = vmul.f32 %v400_v29, %v375_v43  ;;  %v335_v52 = vpack.c.bf16 %v316_v49, %v312_v42  ;;  %v318_v53 = vpop.f32.mrb[11].mxu1  ;;  %v433_v59 = vmul.f32 %v405_v46, %v377_v44 }
 0x1ea   :  { %v432_v55 = vmul.f32 %v400_v29, %v376_v47  ;;  %v336_v56 = vpack.c.bf16 %v318_v53, %v314_v45  ;;  %v434_v62 = vmul.f32 %v405_v46, %v378_v48 }
 0x1eb   :  { %v359_v58 = vadd.bf16 %v349_v9, %v335_v52  ;;  %v444_v60 = vadd.f32 %v443_v50, %v431_v51  ;;  %v479_v50 = vlaneseq }
 0x1ec   :  { %v360_v61 = vadd.bf16 %v349_v9, %v336_v56  ;;  %v457_v63 = vadd.f32 %v456_v54, %v432_v55  ;;  %v470_v55 = vstv %s725_s4 }
 0x1ed   :  { %v367_v0 = vmax.bf16 %v581_v2, %v359_v58  ;;  %v445_v1 = vadd.f32 %v444_v60, %v433_v59  ;;  %vm493_vm2 = vcmp.lt.s32.totalorder %v479_v50, 256 }
 0x1ee   :  { %v322_v4 = vpop.f32.mrb[12].mxu1  ;;  %v368_v5 = vmax.bf16 %v581_v2, %v360_v61  ;;  %v458_v6 = vadd.f32 %v457_v63, %v434_v62 }
 0x1ef   :  { %v324_v7 = vpop.f32.mrb[13].mxu1  ;;  %v379_v8 = vunpack.c.l.bf16 %v367_v0  ;;  %v381_v10 = vunpack.c.h.bf16 %v367_v0 }
 0x1f0   :  { %v380_v12 = vunpack.c.l.bf16 %v368_v5  ;;  %v382_v13 = vunpack.c.h.bf16 %v368_v5  ;;  %v326_v14 = vpop.f32.mrb[14].mxu1 }
 0x1f1   :  { %v435_v15 = vmul.f32 %v410_v3, %v379_v8  ;;  %v337_v16 = vpack.c.bf16 %v326_v14, %v322_v4  ;;  %v328_v9 = vpop.f32.mrb[15].mxu1  ;;  %v437_v19 = vmul.f32 %v415_v11, %v381_v10 }
 0x1f2   :  { %v436_v17 = vmul.f32 %v410_v3, %v380_v12  ;;  %v338_v18 = vpack.c.bf16 %v328_v9, %v324_v7  ;;  %v438_v23 = vmul.f32 %v415_v11, %v382_v13 }
 0x1f3   :  { %v446_v20 = vadd.f32 %v445_v1, %v435_v15  ;;  %v361_v21 = vadd.bf16 %v353_v57, %v337_v16 }
 0x1f4   :  { %v459_v24 = vadd.f32 %v458_v6, %v436_v17  ;;  %v362_v25 = vadd.bf16 %v353_v57, %v338_v18  ;;  %v480_v57 = vshrl.u32 %v479_v50, 7 }
 0x1f5   :  { %v447_v26 = vadd.f32 %v446_v20, %v437_v19  ;;  %v369_v27 = vmax.bf16 %v581_v2, %v361_v21 }
 0x1f6   :  { %v460_v28 = vadd.f32 %v459_v24, %v438_v23  ;;  %v370_v29 = vmax.bf16 %v581_v2, %v362_v25  ;;  %v584_v2 = vmov 1966171168  }
 0x1f7   :  { %v383_v30 = vunpack.c.l.bf16 %v369_v27  ;;  %v385_v31 = vunpack.c.h.bf16 %v369_v27  ;;  %v477_v49 = vunpack.c.l.s4 %v584_v2 }
 0x1f8   :  { %v384_v32 = vunpack.c.l.bf16 %v370_v29  ;;  %v386_v33 = vunpack.c.h.bf16 %v370_v29 }
 0x1f9   :  { %v439_v34 = vmul.f32 %v420_v22, %v383_v30  ;;  %v441_v37 = vmul.f32 %v425_v35, %v385_v31  ;;  %v478_v56 = vunpack.c.0.s8 %v477_v49 }
 0x1fa   :  { %v440_v36 = vmul.f32 %v420_v22, %v384_v32  ;;  %v442_v39 = vmul.f32 %v425_v35, %v386_v33 }
 0x1fb   :  { %v448_v38 = vadd.f32 %v447_v26, %v439_v34  ;;  %v481_v62 = vsub.s32 %v478_v56, %v480_v57 }
 0x1fc   :  { %v461_v40 = vadd.f32 %v460_v28, %v440_v36 }
 0x1fd   :  { %v449_v41 = vadd.f32 %v448_v38, %v441_v37 }
 0x1fe   :  { %v462_v42 = vadd.f32 %v461_v40, %v442_v39 }
 0x1ff   :  { %v450_v43 = vrot.slane %v449_v41, 4 }
 0x200   :  { %v463_v44 = vrot.slane %v462_v42, 4 }
 0x201   :  { %v451_v45 = vadd.f32 %v450_v43, %v449_v41 }
 0x202   :  { %v464_v46 = vadd.f32 %v463_v44, %v462_v42 }
 0x203   :  { %v452_v47 = vrot.slane %v451_v45, 2 }
 0x204   :  { %v465_v48 = vrot.slane %v464_v46, 2 }
 0x205   :  { %v453_v51 = vadd.f32 %v452_v47, %v451_v45 }
 0x206   :  { %v466_v52 = vadd.f32 %v465_v48, %v464_v46 }
 0x207   :  { %v454_v53 = vrot.slane %v453_v51, 1 }
 0x208   :  { %v467_v54 = vrot.slane %v466_v52, 1 }
 0x209   :  { %v455_v58 = vadd.f32 %v454_v53, %v453_v51 }
 0x20a   :  { %v468_v59 = vadd.f32 %v467_v54, %v466_v52 }
 0x20b   :  { %v471_v60 = vadd.f32 %v470_v55, %v455_v58 }
 0x20c   :  { %v472_v61 = vadd.f32 %v470_v55, %v468_v59 }
 0x20e   :  { %v475_v63 = vcombine.low %v471_v60, %v472_v61 }
 0x210   :  { %v482_v0 = vrot.slane %v475_v63, %v481_v62 }
 0x212   :  { %v489_v1 = vrot.slane %v482_v0, %v481_v62 }
 0x214   :  { %495 = vst.msk [vmem:[#allocation3] sm:$0x3] %vm493_vm2, %v489_v1 }
 0x215   :  { %568 = shalt.err (!%p565_p4)
}
 0x216   :  { %s569_s9 = scalar_lea.hbm %s726_s5, 32 }
 0x217   :  { %p570_p5 = scmp.ne.s32.totalorder %s726_s5, %s569_s9  ;;  %p573_p6 = scmp.lt.u32.totalorder %s569_s9, %s726_s5 }
 0x219   :  { %p575_p7 = pnand %p573_p6, %p570_p5 }
 0x21b   :  { %578 = shalt.err (!%p575_p7)
}
 0x21c   :  { %505 = dma.vmem_to_hbm [thread:$0]  %s503_s7, 32, %s726_s5, [#allocation4]  }
 0x21d   :  { %579 = dma.done.wait [#allocation4], 32  }
 0x21e   :  { %580 = vsyncadd [#allocation4], 4294967264 }
 0x21f   :  { %509 = vsyncpa [#allocation4], 1 }

</bundles_post_ra>
